<compile_context>
chip_gen: v7x
topology: tpu7x:2x2x1
jax: 0.10.0
libtpu: 0.0.40
codegen_flags: <defaults>
</compile_context>

<pallas_src>
import functools
import math

import jax
import jax.numpy as jnp
from jax.experimental import pallas as pl
from jax.experimental.pallas import tpu as pltpu

_LANES = 128
_PAD_LOGIT = -100.0  # sigmoid(-100) ~ 3.7e-44, log1p(exp(-100)) ~ 3.7e-44 -> ~0


def _bce_jaccard_kernel(x_ref, y_ref, bce_ref, m1_ref, m2_ref, inter_ref):
    """One grid step: consume a (B, R, 128) tile of logits/targets and add
    per-sample partial sums (kept lane-dense as (1, B, 128)) for
    BCE-with-logits, sigmoid(logits), targets and sigmoid(logits)*targets."""
    k = pl.program_id(1)

    @pl.when(k == 0)
    def _():
        bce_ref[...] = jnp.zeros_like(bce_ref)
        m1_ref[...] = jnp.zeros_like(m1_ref)
        m2_ref[...] = jnp.zeros_like(m2_ref)
        inter_ref[...] = jnp.zeros_like(inter_ref)

    x = x_ref[...].astype(jnp.float32)  # (B, R, 128)
    y = y_ref[...].astype(jnp.float32)

    # Share e = exp(-|x|) between the stable BCE and the sigmoid
    # (2 transcendentals / element instead of 3):
    #   bce        = max(x, 0) - x*y + log1p(e)
    #   sigmoid(x) = 1/(1+e) if x >= 0 else e/(1+e)
    e = jnp.exp(-jnp.abs(x))
    r = 1.0 / (1.0 + e)
    sig = jnp.where(x >= 0.0, r, e * r)
    bce = jnp.maximum(x, 0.0) - x * y + jnp.log1p(e)

    # Partial reduce over the chunk-row (sublane) axis only; the remaining
    # 128-lane sum is tiny and done in the wrapper glue.
    bce_ref[...] += jnp.sum(bce, axis=1)[None]
    m1_ref[...] += jnp.sum(sig, axis=1)[None]
    m2_ref[...] += jnp.sum(y, axis=1)[None]
    inter_ref[...] += jnp.sum(sig * y, axis=1)[None]


def _vmem_working_set_budget():
    """Bytes allowed for the double-buffered input working set
    (2 inputs x 2 pipeline buffers), sized so v7x's 64 MiB VMEM is safe."""
    try:
        cap = pltpu.get_tpu_info().vmem_capacity_bytes
    except Exception:
        cap = 64 << 20  # assume the smallest generation (v7x)
    return min(cap // 4, 24 << 20)


@functools.partial(jax.jit, static_argnames=("log_jaccard",))
def bce_jaccard_loss(logits, targets, log_jaccard=True):
    B = logits.shape[0]
    D = math.prod(logits.shape[1:])

    x = logits.reshape(B, D)
    y = targets.reshape(B, D)
    x_bytes = jnp.dtype(x.dtype).itemsize
    y_bytes = jnp.dtype(y.dtype).itemsize

    # ---- tile sizing: MiB-scale blocks, chunk rows a multiple of 8 --------
    rows_needed = -(-D // _LANES)
    rows8 = max(8, -(-rows_needed // 8) * 8)
    per_block = _vmem_working_set_budget() // 4  # one input, one buffer
    r_max = per_block // (B * _LANES * max(x_bytes, y_bytes))
    if rows8 <= r_max:
        R = rows8
    else:
        R = max(8, (r_max // 8) * 8)
    NC = -(-rows8 // R)                    # number of row-chunks per sample
    ROWS = NC * R
    NP = 2 if (NC % 2 == 0 and NC >= 2) else 1   # v7x: 2 TCs; harmless on 1-TC
    K = NC // NP

    # ---- pad flattened samples so ROWS*128 divides evenly -----------------
    D_pad = ROWS * _LANES
    if D_pad != D:
        x = jnp.pad(x, ((0, 0), (0, D_pad - D)), constant_values=_PAD_LOGIT)
        y = jnp.pad(y, ((0, 0), (0, D_pad - D)), constant_values=0)
    x = x.reshape(B, ROWS, _LANES)
    y = y.reshape(B, ROWS, _LANES)

    in_block = (B, R, _LANES)
    in_index = lambda p, k: (0, p * K + k, 0)
    out_block = (1, B, _LANES)
    out_index = lambda p, k: (p, 0, 0)
    acc_shape = jax.ShapeDtypeStruct((NP, B, _LANES), jnp.float32)

    block_in_bytes = B * R * _LANES * (x_bytes + y_bytes)
    out_bytes = 4 * NP * B * _LANES * 4
    vmem_limit = 2 * block_in_bytes + 2 * out_bytes + (4 << 20)
    vmem_limit = int(min(max(vmem_limit, 16 << 20), 48 << 20))

    n_elems = B * D_pad
    cost = pl.CostEstimate(
        flops=16 * n_elems,
        transcendentals=2 * n_elems,
        bytes_accessed=n_elems * (x_bytes + y_bytes) + out_bytes,
    )

    bce_acc, m1_acc, m2_acc, inter_acc = pl.pallas_call(
        _bce_jaccard_kernel,
        out_shape=(acc_shape,) * 4,
        grid_spec=pltpu.PrefetchScalarGridSpec(
            num_scalar_prefetch=0,
            grid=(NP, K),
            in_specs=[
                pl.BlockSpec(in_block, in_index),
                pl.BlockSpec(in_block, in_index),
            ],
            out_specs=tuple(pl.BlockSpec(out_block, out_index) for _ in range(4)),
        ),
        compiler_params=pltpu.CompilerParams(
            dimension_semantics=("parallel", "arbitrary"),
            vmem_limit_bytes=vmem_limit,
        ),
        cost_estimate=cost,
    )(x, y)

    # ---- tiny scalar glue: mean BCE + (-log of masked-mean soft Jaccard) --
    bce_mean = jnp.sum(bce_acc) / jnp.float32(B * D)  # mean over ORIGINAL count
    m1 = jnp.sum(m1_acc, axis=(0, 2))
    m2 = jnp.sum(m2_acc, axis=(0, 2))
    inter = jnp.sum(inter_acc, axis=(0, 2))

    eps = jnp.float32(1e-15)
    score = (inter + eps) / (m1 + m2 - inter + eps)
    use_jaccard = m2 > 0.0                 # targets.view(bs,-1).sum(1).gt(0)
    cnt = jnp.sum(use_jaccard.astype(jnp.float32))
    jaccard_mean = jnp.sum(jnp.where(use_jaccard, score, 0.0)) / jnp.maximum(cnt, 1.0)
    if log_jaccard:
        jac_loss = -jnp.log(jaccard_mean)
    else:
        jac_loss = 1.0 - jaccard_mean
    return bce_mean + jnp.where(cnt > 0.0, jac_loss, 0.0)


def _reference(logits, targets, log_jaccard=True):
    """Pure-JAX reference mirroring the PyTorch module."""
    B = logits.shape[0]
    x = logits.reshape(-1).astype(jnp.float32)
    y = targets.reshape(-1).astype(jnp.float32)
    bce = jnp.mean(jnp.maximum(x, 0.0) - x * y + jnp.log1p(jnp.exp(-jnp.abs(x))))

    xs = logits.reshape(B, -1).astype(jnp.float32)
    ys = targets.reshape(B, -1).astype(jnp.float32)
    use = jnp.sum(ys, axis=1) > 0
    m1 = jax.nn.sigmoid(xs)
    inter = jnp.sum(m1 * ys, axis=1)
    score = (inter + 1e-15) / (jnp.sum(m1, axis=1) + jnp.sum(ys, axis=1) - inter + 1e-15)
    cnt = jnp.sum(use.astype(jnp.float32))
    jm = jnp.sum(jnp.where(use, score, 0.0)) / jnp.maximum(cnt, 1.0)
    jl = -jnp.log(jm) if log_jaccard else 1.0 - jm
    return bce + jnp.where(cnt > 0.0, jl, 0.0)


if __name__ == "__main__":
    key = jax.random.PRNGKey(0)
    k1, k2 = jax.random.split(key)
    B, C, H, W = 2, 4, 16, 16
    logits = jax.random.normal(k1, (B, C, H, W), dtype=jnp.float32)
    targets = (jax.random.uniform(k2, (B, C, H, W)) > 0.5).astype(jnp.float32)

    loss = bce_jaccard_loss(logits, targets, log_jaccard=True)
    loss = jax.block_until_ready(loss)

    ref = _reference(logits, targets, log_jaccard=True)
    assert jnp.allclose(loss, ref, rtol=1e-5, atol=1e-5), (loss, ref)
    print("KERNEL_OK")
</pallas_src>

<mosaic_0001>
module attributes {stable_mosaic.version = 11 : i64} {
  func.func @_bce_jaccard_kernel(%arg0: i32, %arg1: i32, %arg2: memref<2x8x128xf32, #tpu.memory_space<vmem>>, %arg3: memref<2x8x128xf32, #tpu.memory_space<vmem>>, %arg4: memref<1x2x128xf32, #tpu.memory_space<vmem>>, %arg5: memref<1x2x128xf32, #tpu.memory_space<vmem>>, %arg6: memref<1x2x128xf32, #tpu.memory_space<vmem>>, %arg7: memref<1x2x128xf32, #tpu.memory_space<vmem>>) attributes {dimension_semantics = [#tpu.dimension_semantics<parallel>, #tpu.dimension_semantics<arbitrary>], iteration_bounds = array<i64: 1, 1>, scalar_prefetch = 0 : i64, scratch_operands = 0 : i64, tpu.core_type = #tpu.core_type<tc>, window_params = [{transform_indices = @transform_0, window_bounds = array<i64: 2, 8, 128>}, {transform_indices = @transform_1, window_bounds = array<i64: 2, 8, 128>}, {transform_indices = @transform_2, window_bounds = array<i64: 1, 2, 128>}, {transform_indices = @transform_3, window_bounds = array<i64: 1, 2, 128>}, {transform_indices = @transform_4, window_bounds = array<i64: 1, 2, 128>}, {transform_indices = @transform_5, window_bounds = array<i64: 1, 2, 128>}]} {
    %c0_i32 = arith.constant 0 : i32
    %0 = arith.cmpi eq, %arg1, %c0_i32 : i32
    %1 = arith.extui %0 : i1 to i32
    %c0_i32_0 = arith.constant 0 : i32
    %2 = arith.cmpi ne, %1, %c0_i32_0 : i32
    scf.if %2 {
      %cst_38 = arith.constant 0.000000e+00 : f32
      %44 = vector.broadcast %cst_38 : f32 to vector<1x2x128xf32>
      %c0_39 = arith.constant 0 : index
      %c0_40 = arith.constant 0 : index
      %c0_41 = arith.constant 0 : index
      %45 = vector.load %arg4[%c0_39, %c0_40, %c0_41] : memref<1x2x128xf32, #tpu.memory_space<vmem>>, vector<1x2x128xf32>
      tpu.vector_store %arg4[%c0_39, %c0_40, %c0_41], %44 {strides = array<i32>} : memref<1x2x128xf32, #tpu.memory_space<vmem>>, vector<1x2x128xf32>,
      %cst_42 = arith.constant 0.000000e+00 : f32
      %46 = vector.broadcast %cst_42 : f32 to vector<1x2x128xf32>
      %c0_43 = arith.constant 0 : index
      %c0_44 = arith.constant 0 : index
      %c0_45 = arith.constant 0 : index
      %47 = vector.load %arg5[%c0_43, %c0_44, %c0_45] : memref<1x2x128xf32, #tpu.memory_space<vmem>>, vector<1x2x128xf32>
      tpu.vector_store %arg5[%c0_43, %c0_44, %c0_45], %46 {strides = array<i32>} : memref<1x2x128xf32, #tpu.memory_space<vmem>>, vector<1x2x128xf32>,
      %cst_46 = arith.constant 0.000000e+00 : f32
      %48 = vector.broadcast %cst_46 : f32 to vector<1x2x128xf32>
      %c0_47 = arith.constant 0 : index
      %c0_48 = arith.constant 0 : index
      %c0_49 = arith.constant 0 : index
      %49 = vector.load %arg6[%c0_47, %c0_48, %c0_49] : memref<1x2x128xf32, #tpu.memory_space<vmem>>, vector<1x2x128xf32>
      tpu.vector_store %arg6[%c0_47, %c0_48, %c0_49], %48 {strides = array<i32>} : memref<1x2x128xf32, #tpu.memory_space<vmem>>, vector<1x2x128xf32>,
      %cst_50 = arith.constant 0.000000e+00 : f32
      %50 = vector.broadcast %cst_50 : f32 to vector<1x2x128xf32>
      %c0_51 = arith.constant 0 : index
      %c0_52 = arith.constant 0 : index
      %c0_53 = arith.constant 0 : index
      %51 = vector.load %arg7[%c0_51, %c0_52, %c0_53] : memref<1x2x128xf32, #tpu.memory_space<vmem>>, vector<1x2x128xf32>
      tpu.vector_store %arg7[%c0_51, %c0_52, %c0_53], %50 {strides = array<i32>} : memref<1x2x128xf32, #tpu.memory_space<vmem>>, vector<1x2x128xf32>,
    } else {
    }
    %c0 = arith.constant 0 : index
    %c0_1 = arith.constant 0 : index
    %c0_2 = arith.constant 0 : index
    %3 = vector.load %arg2[%c0, %c0_1, %c0_2] : memref<2x8x128xf32, #tpu.memory_space<vmem>>, vector<2x8x128xf32>
    %c0_3 = arith.constant 0 : index
    %c0_4 = arith.constant 0 : index
    %c0_5 = arith.constant 0 : index
    %4 = vector.load %arg3[%c0_3, %c0_4, %c0_5] : memref<2x8x128xf32, #tpu.memory_space<vmem>>, vector<2x8x128xf32>
    %5 = math.absf %3 : vector<2x8x128xf32>
    %cst = arith.constant 0.000000e+00 : f32
    %6 = vector.broadcast %cst : f32 to vector<2x8x128xf32>
    %7 = arith.subf %6, %5 : vector<2x8x128xf32>
    %8 = math.exp %7 : vector<2x8x128xf32>
    %cst_6 = arith.constant 1.000000e+00 : f32
    %9 = vector.broadcast %cst_6 : f32 to vector<2x8x128xf32>
    %10 = arith.addf %9, %8 : vector<2x8x128xf32>
    %cst_7 = arith.constant 1.000000e+00 : f32
    %11 = vector.broadcast %cst_7 : f32 to vector<2x8x128xf32>
    %12 = arith.divf %11, %10 : vector<2x8x128xf32>
    %cst_8 = arith.constant 0.000000e+00 : f32
    %13 = vector.broadcast %cst_8 : f32 to vector<2x8x128xf32>
    %14 = arith.cmpf oge, %3, %13 : vector<2x8x128xf32>
    %15 = arith.mulf %8, %12 : vector<2x8x128xf32>
    %16 = arith.select %14, %12, %15 : vector<2x8x128xi1>, vector<2x8x128xf32>
    %cst_9 = arith.constant 0.000000e+00 : f32
    %17 = vector.broadcast %cst_9 : f32 to vector<2x8x128xf32>
    %18 = arith.maximumf %3, %17 : vector<2x8x128xf32>
    %19 = arith.mulf %3, %4 : vector<2x8x128xf32>
    %20 = arith.subf %18, %19 : vector<2x8x128xf32>
    %21 = math.log1p %8 : vector<2x8x128xf32>
    %22 = arith.addf %20, %21 : vector<2x8x128xf32>
    %c0_10 = arith.constant 0 : index
    %c0_11 = arith.constant 0 : index
    %c0_12 = arith.constant 0 : index
    %23 = vector.load %arg4[%c0_10, %c0_11, %c0_12] : memref<1x2x128xf32, #tpu.memory_space<vmem>>, vector<1x2x128xf32>
    %cst_13 = arith.constant dense<0.000000e+00> : vector<2x128xf32>
    %24 = vector.multi_reduction <add>, %22, %cst_13 [1] : vector<2x8x128xf32> to vector<2x128xf32>
    %25 = vector.shape_cast %24 : vector<2x128xf32> to vector<1x2x128xf32>
    %26 = arith.addf %23, %25 : vector<1x2x128xf32>
    %c0_14 = arith.constant 0 : index
    %c0_15 = arith.constant 0 : index
    %c0_16 = arith.constant 0 : index
    %27 = vector.load %arg4[%c0_14, %c0_15, %c0_16] : memref<1x2x128xf32, #tpu.memory_space<vmem>>, vector<1x2x128xf32>
    tpu.vector_store %arg4[%c0_14, %c0_15, %c0_16], %26 {strides = array<i32>} : memref<1x2x128xf32, #tpu.memory_space<vmem>>, vector<1x2x128xf32>,
    %c0_17 = arith.constant 0 : index
    %c0_18 = arith.constant 0 : index
    %c0_19 = arith.constant 0 : index
    %28 = vector.load %arg5[%c0_17, %c0_18, %c0_19] : memref<1x2x128xf32, #tpu.memory_space<vmem>>, vector<1x2x128xf32>
    %cst_20 = arith.constant dense<0.000000e+00> : vector<2x128xf32>
    %29 = vector.multi_reduction <add>, %16, %cst_20 [1] : vector<2x8x128xf32> to vector<2x128xf32>
    %30 = vector.shape_cast %29 : vector<2x128xf32> to vector<1x2x128xf32>
    %31 = arith.addf %28, %30 : vector<1x2x128xf32>
    %c0_21 = arith.constant 0 : index
    %c0_22 = arith.constant 0 : index
    %c0_23 = arith.constant 0 : index
    %32 = vector.load %arg5[%c0_21, %c0_22, %c0_23] : memref<1x2x128xf32, #tpu.memory_space<vmem>>, vector<1x2x128xf32>
    tpu.vector_store %arg5[%c0_21, %c0_22, %c0_23], %31 {strides = array<i32>} : memref<1x2x128xf32, #tpu.memory_space<vmem>>, vector<1x2x128xf32>,
    %c0_24 = arith.constant 0 : index
    %c0_25 = arith.constant 0 : index
    %c0_26 = arith.constant 0 : index
    %33 = vector.load %arg6[%c0_24, %c0_25, %c0_26] : memref<1x2x128xf32, #tpu.memory_space<vmem>>, vector<1x2x128xf32>
    %cst_27 = arith.constant dense<0.000000e+00> : vector<2x128xf32>
    %34 = vector.multi_reduction <add>, %4, %cst_27 [1] : vector<2x8x128xf32> to vector<2x128xf32>
    %35 = vector.shape_cast %34 : vector<2x128xf32> to vector<1x2x128xf32>
    %36 = arith.addf %33, %35 : vector<1x2x128xf32>
    %c0_28 = arith.constant 0 : index
    %c0_29 = arith.constant 0 : index
    %c0_30 = arith.constant 0 : index
    %37 = vector.load %arg6[%c0_28, %c0_29, %c0_30] : memref<1x2x128xf32, #tpu.memory_space<vmem>>, vector<1x2x128xf32>
    tpu.vector_store %arg6[%c0_28, %c0_29, %c0_30], %36 {strides = array<i32>} : memref<1x2x128xf32, #tpu.memory_space<vmem>>, vector<1x2x128xf32>,
    %c0_31 = arith.constant 0 : index
    %c0_32 = arith.constant 0 : index
    %c0_33 = arith.constant 0 : index
    %38 = vector.load %arg7[%c0_31, %c0_32, %c0_33] : memref<1x2x128xf32, #tpu.memory_space<vmem>>, vector<1x2x128xf32>
    %39 = arith.mulf %16, %4 : vector<2x8x128xf32>
    %cst_34 = arith.constant dense<0.000000e+00> : vector<2x128xf32>
    %40 = vector.multi_reduction <add>, %39, %cst_34 [1] : vector<2x8x128xf32> to vector<2x128xf32>
    %41 = vector.shape_cast %40 : vector<2x128xf32> to vector<1x2x128xf32>
    %42 = arith.addf %38, %41 : vector<1x2x128xf32>
    %c0_35 = arith.constant 0 : index
    %c0_36 = arith.constant 0 : index
    %c0_37 = arith.constant 0 : index
    %43 = vector.load %arg7[%c0_35, %c0_36, %c0_37] : memref<1x2x128xf32, #tpu.memory_space<vmem>>, vector<1x2x128xf32>
    tpu.vector_store %arg7[%c0_35, %c0_36, %c0_37], %42 {strides = array<i32>} : memref<1x2x128xf32, #tpu.memory_space<vmem>>, vector<1x2x128xf32>,
    return
  }
  func.func @transform_0(%arg0: i32, %arg1: i32) -> (i32, i32, i32) {
    %c1_i32 = arith.constant 1 : i32
    %0 = arith.muli %arg0, %c1_i32 : i32
    %1 = arith.addi %0, %arg1 : i32
    %c0_i32 = arith.constant 0 : i32
    %c0_i32_0 = arith.constant 0 : i32
    %c0_i32_1 = arith.constant 0 : i32
    return %c0_i32, %1, %c0_i32_0 : i32, i32, i32
  }
  func.func @transform_1(%arg0: i32, %arg1: i32) -> (i32, i32, i32) {
    %c1_i32 = arith.constant 1 : i32
    %0 = arith.muli %arg0, %c1_i32 : i32
    %1 = arith.addi %0, %arg1 : i32
    %c0_i32 = arith.constant 0 : i32
    %c0_i32_0 = arith.constant 0 : i32
    %c0_i32_1 = arith.constant 0 : i32
    return %c0_i32, %1, %c0_i32_0 : i32, i32, i32
  }
  func.func @transform_2(%arg0: i32, %arg1: i32) -> (i32, i32, i32) {
    %c0_i32 = arith.constant 0 : i32
    %c0_i32_0 = arith.constant 0 : i32
    %c0_i32_1 = arith.constant 0 : i32
    return %arg0, %c0_i32, %c0_i32_0 : i32, i32, i32
  }
  func.func @transform_3(%arg0: i32, %arg1: i32) -> (i32, i32, i32) {
    %c0_i32 = arith.constant 0 : i32
    %c0_i32_0 = arith.constant 0 : i32
    %c0_i32_1 = arith.constant 0 : i32
    return %arg0, %c0_i32, %c0_i32_0 : i32, i32, i32
  }
  func.func @transform_4(%arg0: i32, %arg1: i32) -> (i32, i32, i32) {
    %c0_i32 = arith.constant 0 : i32
    %c0_i32_0 = arith.constant 0 : i32
    %c0_i32_1 = arith.constant 0 : i32
    return %arg0, %c0_i32, %c0_i32_0 : i32, i32, i32
  }
  func.func @transform_5(%arg0: i32, %arg1: i32) -> (i32, i32, i32) {
    %c0_i32 = arith.constant 0 : i32
    %c0_i32_0 = arith.constant 0 : i32
    %c0_i32_1 = arith.constant 0 : i32
    return %arg0, %c0_i32, %c0_i32_0 : i32, i32, i32
  }
}

</mosaic_0001>

<bundles_post_ra>
// kernel: bce_jaccard_loss.1
= control target key start
LH: loop header
LB: loop body
LE: loop exit
PB: predicated region body
PF: predicated region fallthrough
CT: control target
= control target key end

     0   :  { %v227_v0 = vmov 0.0   ;;  %vm122_vm0 = vcmask 1041409   ;;  %s334_s2 = inlined_call_operand.vmem [shape: f32[1,2,128], index: 2, kind: output, shape index: {0}]   ;;  %s335_s3 = inlined_call_operand.vmem [shape: f32[1,2,128], index: 3, kind: output, shape index: {1}]   ;;  %s336_s4 = inlined_call_operand.vmem [shape: f32[1,2,128], index: 4, kind: output, shape index: {2}]   ;;  %s337_s5 = inlined_call_operand.vmem [shape: f32[1,2,128], index: 5, kind: output, shape index: {3}]   ;;  %s338_s0 = inlined_call_operand.vmem [shape: f32[2,8,128], index: 0, kind: input, shape index: {}]   ;;  %s339_s1 = inlined_call_operand.vmem [shape: f32[2,8,128], index: 1, kind: input, shape index: {}]  }
   0x1   :  { %53 = vst [vmem:[%s334_s2] sm:$0x3] %v227_v0  ;;  %54 = vst [vmem:[%s335_s3] sm:$0x3] %v227_v0  ;;  %v273_v1 = vld [vmem:[%s338_s0] sm:$0xff]  ;;  %v278_v2 = vld [vmem:[%s338_s0 + $0x8] sm:$0xff] }
   0x2   :  { %55 = vst [vmem:[%s336_s4] sm:$0x3] %v227_v0  ;;  %56 = vst [vmem:[%s337_s5] sm:$0x3] %v227_v0  ;;  %v61_v3 = vand.u32 2147483647, %v273_v1  ;;  %v62_v4 = vand.u32 2147483647, %v278_v2 }
   0x3   :  { %v59_v5 = vld [vmem:[%s339_s1] sm:$0xff]  ;;  %v288_v6 = vld [vmem:[%s339_s1 + $0x8] sm:$0xff]  ;;  %v81_v33 = vmax.f32 %v273_v1, 0.0  ;;  %v82_v37 = vmax.f32 %v278_v2, 0.0  ;;  %vm75_vm1 = vcmp.ge.f32.partialorder %v273_v1, 0.0  ;;  %vm76_vm2 = vcmp.ge.f32.partialorder %v278_v2, 0.0 }
   0x4   :  { %v63_v7 = vsub.f32 0.0, %v61_v3  ;;  %v64_v8 = vsub.f32 0.0, %v62_v4  ;;  %v147_v9 = vrot.slane %v59_v5, 4  ;;  %v153_v10 = vrot.slane %v288_v6, 4 }
   0x5   :  { %v83_v34 = vmul.f32 %v59_v5, %v273_v1  ;;  %v84_v38 = vmul.f32 %v288_v6, %v278_v2 }
   0x6   :  { %v65_v11 = vmul.f32 1.442695, %v63_v7  ;;  %v67_v12 = vmul.f32 1.442695, %v64_v8  ;;  %v148_v13 = vadd.f32 %v147_v9, %v59_v5  ;;  %v154_v14 = vadd.f32 %v153_v10, %v288_v6 }
   0x7   :  { %v85_v45 = vsub.f32 %v81_v33, %v83_v34  ;;  %v86_v50 = vsub.f32 %v82_v37, %v84_v38 }
   0x8   :  { %215 = vpow2.f32 %v65_v11  ;;  %v149_v15 = vrot.slane %v148_v13, 2  ;;  %v155_v16 = vrot.slane %v154_v14, 2 }
   0x9   :  { %217 = vpow2.f32 %v67_v12  ;;  %v146_v21 = vld [vmem:[%s336_s4] sm:$0x3] }
   0xa   :  { %v150_v17 = vadd.f32 %v149_v15, %v148_v13  ;;  %v156_v18 = vadd.f32 %v155_v16, %v154_v14 }
   0xc   :  { %v151_v19 = vrot.slane %v150_v17, 1  ;;  %v157_v20 = vrot.slane %v156_v18, 1 }
   0xe   :  { %v152_v22 = vadd.f32 %v151_v19, %v150_v17  ;;  %v158_v23 = vadd.f32 %v157_v20, %v156_v18 }
  0x10   :  { %v161_v24 = vsel %vm122_vm0, %v158_v23, %v152_v22 }
  0x11   :  { %v163_v26 = vadd.f32 %v161_v24, %v146_v21 }
  0x12   :  { %v216_v25 = vpop.eup %215 }
  0x13   :  { %v218_v27 = vpop.eup %217  ;;  %v69_v28 = vadd.f32 1.0, %v216_v25  ;;  %164 = vst [vmem:[%s336_s4] sm:$0x3] %v163_v26  ;;  %v90_v30 = vmul.f32 -0.5, %v216_v25  ;;  %v93_v35 = vand.u32 2147483647, %v216_v25 }
  0x14   :  { %v70_v29 = vadd.f32 1.0, %v218_v27  ;;  %v99_v31 = vmul.f32 -0.5, %v218_v27  ;;  %v102_v39 = vand.u32 2147483647, %v218_v27 }
  0x15   :  { %219 = vrcp.f32 %v69_v28  ;;  %v91_v32 = vadd.f32 1.0, %v90_v30  ;;  %vm306_vm3 = vcmp.lt.f32.partialorder %v93_v35, 0.0004427343 }
  0x16   :  { %221 = vrcp.f32 %v70_v29  ;;  %v100_v36 = vadd.f32 1.0, %v99_v31  ;;  %vm103_vm4 = vcmp.lt.f32.partialorder %v102_v39, 0.0004427343 }
  0x17   :  { %223 = vlog2.f32 %v69_v28  ;;  %v92_v42 = vmul.f32 %v216_v25, %v91_v32  ;;  %v165_v32 = vld [vmem:[%s337_s5] sm:$0x3] }
  0x18   :  { %225 = vlog2.f32 %v70_v29  ;;  %v101_v47 = vmul.f32 %v218_v27, %v100_v36  ;;  %v107_v36 = vld [vmem:[%s334_s2] sm:$0x3] }
  0x1f   :  { %v220_v40 = vpop.eup %219 }
  0x20   :  { %v222_v41 = vpop.eup %221  ;;  %v77_v43 = vmul.f32 %v220_v40, %v216_v25  ;;  %v127_v25 = vld [vmem:[%s335_s3] sm:$0x3] }
  0x21   :  { %v224_v44 = vpop.eup %223  ;;  %v78_v48 = vmul.f32 %v222_v41, %v218_v27 }
  0x22   :  { %v226_v49 = vpop.eup %225  ;;  %v89_v51 = vmul.f32 0.6931472, %v224_v44  ;;  %v79_v52 = vsel %vm75_vm1, %v220_v40, %v77_v43 }
  0x23   :  { %v98_v53 = vmul.f32 0.6931472, %v226_v49  ;;  %v80_v54 = vsel %vm76_vm2, %v222_v41, %v78_v48  ;;  %v128_v55 = vrot.slane %v79_v52, 4  ;;  %v166_v56 = vmul.f32 %v79_v52, %v59_v5 }
  0x24   :  { %v95_v57 = vsel %vm306_vm3, %v92_v42, %v89_v51  ;;  %v134_v58 = vrot.slane %v80_v54, 4  ;;  %v167_v59 = vmul.f32 %v80_v54, %v288_v6 }
  0x25   :  { %v104_v60 = vsel %vm103_vm4, %v101_v47, %v98_v53  ;;  %v105_v61 = vadd.f32 %v95_v57, %v85_v45  ;;  %v129_v62 = vadd.f32 %v128_v55, %v79_v52  ;;  %v168_v63 = vrot.slane %v166_v56, 4 }
  0x26   :  { %v106_v0 = vadd.f32 %v104_v60, %v86_v50  ;;  %v135_v1 = vadd.f32 %v134_v58, %v80_v54  ;;  %v174_v2 = vrot.slane %v167_v59, 4 }
  0x27   :  { %v108_v3 = vrot.slane %v105_v61, 4  ;;  %v130_v4 = vrot.slane %v129_v62, 2  ;;  %v169_v7 = vadd.f32 %v168_v63, %v166_v56 }
  0x28   :  { %v114_v8 = vrot.slane %v106_v0, 4  ;;  %v136_v9 = vrot.slane %v135_v1, 2  ;;  %v175_v10 = vadd.f32 %v174_v2, %v167_v59 }
  0x29   :  { %v109_v5 = vadd.f32 %v108_v3, %v105_v61  ;;  %v131_v11 = vadd.f32 %v130_v4, %v129_v62  ;;  %v170_v12 = vrot.slane %v169_v7, 2 }
  0x2a   :  { %v115_v13 = vadd.f32 %v114_v8, %v106_v0  ;;  %v137_v14 = vadd.f32 %v136_v9, %v135_v1  ;;  %v176_v15 = vrot.slane %v175_v10, 2 }
  0x2b   :  { %v110_v6 = vrot.slane %v109_v5, 2  ;;  %v132_v16 = vrot.slane %v131_v11, 1  ;;  %v171_v17 = vadd.f32 %v170_v12, %v169_v7 }
  0x2c   :  { %v116_v18 = vrot.slane %v115_v13, 2  ;;  %v138_v19 = vrot.slane %v137_v14, 1  ;;  %v177_v20 = vadd.f32 %v176_v15, %v175_v10 }
  0x2d   :  { %v111_v21 = vadd.f32 %v110_v6, %v109_v5  ;;  %v133_v22 = vadd.f32 %v132_v16, %v131_v11  ;;  %v172_v23 = vrot.slane %v171_v17, 1 }
  0x2e   :  { %v117_v24 = vadd.f32 %v116_v18, %v115_v13  ;;  %v139_v26 = vadd.f32 %v138_v19, %v137_v14  ;;  %v178_v27 = vrot.slane %v177_v20, 1 }
  0x2f   :  { %v112_v28 = vrot.slane %v111_v21, 1  ;;  %v173_v29 = vadd.f32 %v172_v23, %v171_v17 }
  0x30   :  { %v118_v30 = vrot.slane %v117_v24, 1  ;;  %v142_v31 = vsel %vm122_vm0, %v139_v26, %v133_v22  ;;  %v179_v33 = vadd.f32 %v178_v27, %v177_v20 }
  0x31   :  { %v113_v34 = vadd.f32 %v112_v28, %v111_v21  ;;  %v144_v35 = vadd.f32 %v142_v31, %v127_v25 }
  0x32   :  { %v119_v37 = vadd.f32 %v118_v30, %v117_v24  ;;  %v182_v38 = vsel %vm122_vm0, %v179_v33, %v173_v29 }
  0x33   :  { %145 = vst [vmem:[%s335_s3] sm:$0x3] %v144_v35  ;;  %v184_v39 = vadd.f32 %v182_v38, %v165_v32 }
  0x34   :  { %v123_v40 = vsel %vm122_vm0, %v119_v37, %v113_v34 }
  0x35   :  { %v125_v41 = vadd.f32 %v123_v40, %v107_v36  ;;  %185 = vst [vmem:[%s337_s5] sm:$0x3] %v184_v39 }
  0x37   :  { %126 = vst [vmem:[%s334_s2] sm:$0x3] %v125_v41 }

</bundles_post_ra>
